<compile_context>
chip_gen: v7x
topology: tpu7x:2x2x1
jax: 0.10.0
libtpu: 0.0.40
codegen_flags: <defaults>
</compile_context>

<pallas_src>
import functools

import jax
import jax.numpy as jnp
from jax import lax
from jax.experimental import pallas as pl
from jax.experimental.pallas import tpu as pltpu


_VMEM_LIMIT_BYTES = 48 * 1024 * 1024  # comfortable on v5e/v6e (128 MiB) and v7x (64 MiB)


# ----------------------------- kernels -----------------------------

def rowmm_kernel(x_ref, w_ref, o_ref):
    # o = x @ W   (row-tiled over the grid; W resident)
    o_ref[...] = jnp.dot(x_ref[...], w_ref[...],
                         preferred_element_type=jnp.float32).astype(o_ref.dtype)


def gcn_agg_relu_kernel(adj_ref, s_ref, b_ref, o_ref, acc_ref):
    # o = relu(adj @ s + b); reduction over the k grid axis into a f32 accumulator.
    @pl.when(pl.program_id(1) == 0)
    def _():
        acc_ref[...] = jnp.zeros_like(acc_ref)

    acc_ref[...] += jnp.dot(adj_ref[...], s_ref[...],
                            preferred_element_type=jnp.float32)

    @pl.when(pl.program_id(1) == pl.num_programs(1) - 1)
    def _():
        o_ref[...] = jnp.maximum(acc_ref[...] + b_ref[...], 0.0).astype(o_ref.dtype)


def gcn_agg_reparam_kernel(adj_ref, s_ref, b_ref, eps_ref, z_ref, acc_ref, *, nclass):
    # Fused second GCN layer with mean|logstd packed on lanes, then reparameterize:
    #   ml = adj @ s + b ; z = eps * exp(ml[:, nclass:]) + ml[:, :nclass]
    @pl.when(pl.program_id(1) == 0)
    def _():
        acc_ref[...] = jnp.zeros_like(acc_ref)

    acc_ref[...] += jnp.dot(adj_ref[...], s_ref[...],
                            preferred_element_type=jnp.float32)

    @pl.when(pl.program_id(1) == pl.num_programs(1) - 1)
    def _():
        ml = acc_ref[...] + b_ref[...]
        mean = ml[:, :nclass]
        logstd = ml[:, nclass:]
        z = eps_ref[...] * jnp.exp(logstd) + mean
        z_ref[...] = z.astype(z_ref.dtype)


def decoder_kernel(zi_ref, zj_ref, o_ref):
    # out[i, j] = sigmoid(z_i @ z_j^T) — transposed-RHS contraction, no XLU transpose.
    logits = lax.dot_general(zi_ref[...], zj_ref[...],
                             dimension_numbers=(((1,), (1,)), ((), ())),
                             preferred_element_type=jnp.float32)
    o_ref[...] = jax.nn.sigmoid(logits)


# ----------------------------- tiling helper -----------------------------

def _tile(dim, preferred, align):
    """Largest tile <= preferred that divides dim and is `align`-aligned; else full dim."""
    t = min(preferred, dim)
    t -= t % align
    while t >= align:
        if dim % t == 0:
            return t
        t -= align
    return dim  # fall back to untiled (equal-to-full-dim blocks are always legal)


# ----------------------------- stage wrappers -----------------------------

def _row_transform(x, w, *, tile_m):
    """rows(x) @ W, row-tiled; output bf16."""
    m, k = x.shape
    n = w.shape[1]
    tm = _tile(m, tile_m, 8)
    return pl.pallas_call(
        rowmm_kernel,
        out_shape=jax.ShapeDtypeStruct((m, n), jnp.bfloat16),
        grid_spec=pltpu.PrefetchScalarGridSpec(
            num_scalar_prefetch=0,
            grid=(m // tm,),
            in_specs=[pl.BlockSpec((tm, k), lambda i: (i, 0)),
                      pl.BlockSpec((k, n), lambda i: (0, 0))],
            out_specs=pl.BlockSpec((tm, n), lambda i: (i, 0)),
        ),
        compiler_params=pltpu.CompilerParams(
            dimension_semantics=("parallel",),
            vmem_limit_bytes=_VMEM_LIMIT_BYTES),
    )(x, w)


def _gcn_aggregate_relu(adj, support, bias, *, tile_m, tile_k):
    """relu(adj @ support + bias), tiled (rows parallel, contraction arbitrary)."""
    n = adj.shape[0]
    cols = support.shape[1]
    tm = _tile(n, tile_m, 8)
    tk = _tile(n, tile_k, 128)
    return pl.pallas_call(
        gcn_agg_relu_kernel,
        out_shape=jax.ShapeDtypeStruct((n, cols), jnp.bfloat16),
        grid_spec=pltpu.PrefetchScalarGridSpec(
            num_scalar_prefetch=0,
            grid=(n // tm, n // tk),
            in_specs=[pl.BlockSpec((tm, tk), lambda i, k: (i, k)),
                      pl.BlockSpec((tk, cols), lambda i, k: (k, 0)),
                      pl.BlockSpec((1, cols), lambda i, k: (0, 0))],
            out_specs=pl.BlockSpec((tm, cols), lambda i, k: (i, 0)),
            scratch_shapes=[pltpu.VMEM((tm, cols), jnp.float32)],
        ),
        compiler_params=pltpu.CompilerParams(
            dimension_semantics=("parallel", "arbitrary"),
            vmem_limit_bytes=_VMEM_LIMIT_BYTES),
    )(adj, support, bias)


def _gcn_aggregate_reparam(adj, support_cat, bias_cat, eps, nclass, *, tile_m, tile_k):
    """Fused mean|logstd GCN layer + reparameterization -> z [N, nclass] (bf16)."""
    n = adj.shape[0]
    cols = support_cat.shape[1]  # 2 * nclass
    tm = _tile(n, tile_m, 8)
    tk = _tile(n, tile_k, 128)
    kernel = functools.partial(gcn_agg_reparam_kernel, nclass=nclass)
    return pl.pallas_call(
        kernel,
        out_shape=jax.ShapeDtypeStruct((n, nclass), jnp.bfloat16),
        grid_spec=pltpu.PrefetchScalarGridSpec(
            num_scalar_prefetch=0,
            grid=(n // tm, n // tk),
            in_specs=[pl.BlockSpec((tm, tk), lambda i, k: (i, k)),
                      pl.BlockSpec((tk, cols), lambda i, k: (k, 0)),
                      pl.BlockSpec((1, cols), lambda i, k: (0, 0)),
                      pl.BlockSpec((tm, nclass), lambda i, k: (i, 0))],
            out_specs=pl.BlockSpec((tm, nclass), lambda i, k: (i, 0)),
            scratch_shapes=[pltpu.VMEM((tm, cols), jnp.float32)],
        ),
        compiler_params=pltpu.CompilerParams(
            dimension_semantics=("parallel", "arbitrary"),
            vmem_limit_bytes=_VMEM_LIMIT_BYTES),
    )(adj, support_cat, bias_cat, eps)


def _dot_product_decode(z, *, tile_m, tile_n):
    """sigmoid(z @ z.T) tiled over (i, j) output blocks."""
    n, nclass = z.shape
    tm = _tile(n, tile_m, 8)
    tn = _tile(n, tile_n, 128)
    cost = pl.CostEstimate(flops=2 * n * n * nclass,
                           transcendentals=n * n,
                           bytes_accessed=2 * n * nclass * 2 + n * n * 4)
    return pl.pallas_call(
        decoder_kernel,
        out_shape=jax.ShapeDtypeStruct((n, n), jnp.float32),
        grid_spec=pltpu.PrefetchScalarGridSpec(
            num_scalar_prefetch=0,
            grid=(n // tm, n // tn),
            in_specs=[pl.BlockSpec((tm, nclass), lambda i, j: (i, 0)),
                      pl.BlockSpec((tn, nclass), lambda i, j: (j, 0))],
            out_specs=pl.BlockSpec((tm, tn), lambda i, j: (i, j)),
        ),
        compiler_params=pltpu.CompilerParams(
            dimension_semantics=("parallel", "parallel"),
            vmem_limit_bytes=_VMEM_LIMIT_BYTES),
        cost_estimate=cost,
    )(z, z)


# ----------------------------- forward -----------------------------

def vgcn_link_forward(x, adj, params, eps, *,
                      tile_m=256, tile_k=512, tile_n=256):
    """params = (W1, b1, W11, b11, W12, b12); returns A_pred [N, N] (f32)."""
    W1, b1, W11, b11, W12, b12 = params
    nclass = W11.shape[1]

    # Fuse mean/logstd branches: one packed weight/bias -> one adj matmul.
    Wcat = jnp.concatenate([W11, W12], axis=1)
    bcat = jnp.concatenate([b11, b12], axis=1).astype(jnp.float32)

    # bf16 MXU inputs (halves adj DMA bytes); f32 accumulation inside the kernels.
    x_b = x.astype(jnp.bfloat16)
    adj_b = adj.astype(jnp.bfloat16)

    support1 = _row_transform(x_b, W1.astype(jnp.bfloat16), tile_m=tile_m)
    hidden = _gcn_aggregate_relu(adj_b, support1, b1.astype(jnp.float32),
                                 tile_m=tile_m, tile_k=tile_k)
    support_cat = _row_transform(hidden, Wcat.astype(jnp.bfloat16), tile_m=tile_m)
    z = _gcn_aggregate_reparam(adj_b, support_cat, bcat, eps.astype(jnp.float32),
                               nclass, tile_m=tile_m, tile_k=tile_k)
    return _dot_product_decode(z, tile_m=tile_m, tile_n=tile_n)


# ----------------------------- params / references -----------------------------

def init_params(key, nfeat, nhid, nclass):
    """Deterministic Kipf-style uniform init: U(-1/sqrt(out), 1/sqrt(out))."""
    ks = jax.random.split(key, 6)

    def u(k, shape, fan_out):
        stdv = 1.0 / (fan_out ** 0.5)
        return jax.random.uniform(k, shape, jnp.float32, -stdv, stdv)

    W1 = u(ks[0], (nfeat, nhid), nhid)
    b1 = u(ks[1], (1, nhid), nhid)
    W11 = u(ks[2], (nhid, nclass), nclass)
    b11 = u(ks[3], (1, nclass), nclass)
    W12 = u(ks[4], (nhid, nclass), nclass)
    b12 = u(ks[5], (1, nclass), nclass)
    return (W1, b1, W11, b11, W12, b12)


def reference_forward_f32(x, adj, params, eps):
    W1, b1, W11, b11, W12, b12 = params
    hidden = jnp.maximum(adj @ (x @ W1) + b1, 0.0)
    mean = adj @ (hidden @ W11) + b11
    logstd = adj @ (hidden @ W12) + b12
    z = eps * jnp.exp(logstd) + mean
    return jax.nn.sigmoid(z @ z.T)


def reference_forward_bf16(x, adj, params, eps):
    """Mirrors the kernel's bf16-input / f32-accumulation arithmetic exactly."""
    W1, b1, W11, b11, W12, b12 = params
    bf = jnp.bfloat16

    def dot(a, b):
        return jnp.dot(a.astype(bf), b.astype(bf),
                       preferred_element_type=jnp.float32)

    nclass = W11.shape[1]
    Wcat = jnp.concatenate([W11, W12], axis=1)
    bcat = jnp.concatenate([b11, b12], axis=1)

    support1 = dot(x, W1).astype(bf)
    hidden = jnp.maximum(dot(adj, support1) + b1, 0.0).astype(bf)
    support_cat = dot(hidden, Wcat).astype(bf)
    ml = dot(adj, support_cat) + bcat
    mean, logstd = ml[:, :nclass], ml[:, nclass:]
    z = (eps * jnp.exp(logstd) + mean).astype(bf)
    return jax.nn.sigmoid(dot(z, z.T))


if __name__ == "__main__":
    N, nfeat, nhid, nclass = 16, 32, 32, 8

    key = jax.random.PRNGKey(0)
    k_x, k_adj, k_eps, k_param = jax.random.split(key, 4)

    x = jax.random.normal(k_x, (N, nfeat), jnp.float32)

    # Symmetric, row-normalized adjacency with self loops.
    a = (jax.random.uniform(k_adj, (N, N)) > 0.7).astype(jnp.float32)
    a = jnp.maximum(a, a.T) + jnp.eye(N, dtype=jnp.float32)
    adj = a / jnp.sum(a, axis=1, keepdims=True)

    params = init_params(k_param, nfeat, nhid, nclass)
    eps = jax.random.normal(k_eps, (N, nclass), jnp.float32)

    A_pred = jax.block_until_ready(vgcn_link_forward(x, adj, params, eps))

    A_ref_bf16 = reference_forward_bf16(x, adj, params, eps)
    A_ref_f32 = reference_forward_f32(x, adj, params, eps)

    assert A_pred.shape == (N, N)
    # Tight check against a bit-matched bf16/f32-accumulation reference.
    assert jnp.allclose(A_pred, A_ref_bf16, atol=5e-3, rtol=5e-3), \
        float(jnp.max(jnp.abs(A_pred - A_ref_bf16)))
    # Loose sanity check against the pure-f32 spec.
    assert jnp.allclose(A_pred, A_ref_f32, atol=5e-2, rtol=5e-2), \
        float(jnp.max(jnp.abs(A_pred - A_ref_f32)))

    print("KERNEL_OK")
</pallas_src>

<mosaic_0001>
module attributes {stable_mosaic.version = 11 : i64} {
  func.func @rowmm_kernel(%arg0: i32, %arg1: memref<16x32xbf16, #tpu.memory_space<vmem>>, %arg2: memref<32x32xbf16, #tpu.memory_space<vmem>>, %arg3: memref<16x32xbf16, #tpu.memory_space<vmem>>) attributes {dimension_semantics = [#tpu.dimension_semantics<parallel>], iteration_bounds = array<i64: 1>, scalar_prefetch = 0 : i64, scratch_operands = 0 : i64, tpu.core_type = #tpu.core_type<tc>, window_params = [{transform_indices = @transform_0, window_bounds = array<i64: 16, 32>}, {pipeline_mode = #tpu.pipeline_mode<synchronous>, transform_indices = @transform_1, window_bounds = array<i64: 32, 32>}, {transform_indices = @transform_2, window_bounds = array<i64: 16, 32>}]} {
    %c0 = arith.constant 0 : index
    %c0_0 = arith.constant 0 : index
    %0 = vector.load %arg1[%c0, %c0_0] : memref<16x32xbf16, #tpu.memory_space<vmem>>, vector<16x32xbf16>
    %c0_1 = arith.constant 0 : index
    %c0_2 = arith.constant 0 : index
    %1 = vector.load %arg2[%c0_1, %c0_2] : memref<32x32xbf16, #tpu.memory_space<vmem>>, vector<32x32xbf16>
    %cst = arith.constant dense<0.000000e+00> : vector<16x32xf32>
    %2 = tpu.matmul %0, %1, %cst {dimension_numbers = #tpu.dot_dimension_numbers<[1], [0], [0], [1], [0, 0, 1, 1], [], []>} : vector<16x32xbf16>, vector<32x32xbf16>, vector<16x32xf32> -> vector<16x32xf32>
    %3 = arith.truncf %2 : vector<16x32xf32> to vector<16x32xbf16>
    %c0_3 = arith.constant 0 : index
    %c0_4 = arith.constant 0 : index
    %4 = vector.load %arg3[%c0_3, %c0_4] : memref<16x32xbf16, #tpu.memory_space<vmem>>, vector<16x32xbf16>
    tpu.vector_store %arg3[%c0_3, %c0_4], %3 {strides = array<i32>} : memref<16x32xbf16, #tpu.memory_space<vmem>>, vector<16x32xbf16>,
    return
  }
  func.func @transform_0(%arg0: i32) -> (i32, i32) {
    %c0_i32 = arith.constant 0 : i32
    %c0_i32_0 = arith.constant 0 : i32
    return %arg0, %c0_i32 : i32, i32
  }
  func.func @transform_1(%arg0: i32) -> (i32, i32) {
    %c0_i32 = arith.constant 0 : i32
    %c0_i32_0 = arith.constant 0 : i32
    %c0_i32_1 = arith.constant 0 : i32
    return %c0_i32, %c0_i32_0 : i32, i32
  }
  func.func @transform_2(%arg0: i32) -> (i32, i32) {
    %c0_i32 = arith.constant 0 : i32
    %c0_i32_0 = arith.constant 0 : i32
    return %arg0, %c0_i32 : i32, i32
  }
}

</mosaic_0001>

<bundles_post_ra>
// kernel: tpu_custom_call.1
= control target key start
LH: loop header
LB: loop body
LE: loop exit
PB: predicated region body
PF: predicated region fallthrough
CT: control target
= control target key end

     0   :  { %7 = vsyncpa [#allocation3], 0  ;;  %s306_s0 = inlined_call_operand.hbm [shape: bf16[16,32], index: 0, kind: input, shape index: {}]   ;;  %s307_s1 = inlined_call_operand.hbm [shape: bf16[32,32], index: 1, kind: input, shape index: {}]   ;;  %s308_s2 = inlined_call_operand.hbm [shape: bf16[16,32], index: 2, kind: output, shape index: {}]  }
   0x1   :  { %8 = vsyncpa [#allocation6], 0 }
   0x2   :  { %9 = vsyncpa [#allocation4], 0  ;;  %s239_s9 = smov [#allocation2]   ;;  %s167_s13 = scalar_lea.hbm %s306_s0, 128 }
   0x3   :  { %s15_s10 = sshll.u32 %s239_s9, 4  ;;  %p168_p0 = scmp.ne.s32.totalorder %s306_s0, %s167_s13  ;;  %s16_s10 = int_to_ptr.vmem [resolvable:$true] %s15_s10 }
   0x4   :  { %p171_p1 = scmp.lt.u32.totalorder %s167_s13, %s306_s0 }
   0x6   :  { %p173_p2 = pnand %p171_p1, %p168_p0 }
   0x8   :  { %176 = shalt.err (!%p173_p2)
}
   0x9   :  { %s177_s18 = scalar_lea.vmem %s16_s10, 128  ;;  %p182_p4 = scmp.lt.s32.totalorder %s16_s10, %s16_s10 }
   0xa   :  { %p178_p3 = scmp.ne.s32.totalorder %s16_s10, %s177_s18  ;;  %p183_p5 = scmp.lt.s32.totalorder %s177_s18, %s177_s18 }
   0xc   :  { %p184_p6 = por %p183_p5, %p182_p4 }
   0xe   :  { %p185_p7 = pnand %p184_p6, %p178_p3 }
  0x10   :  { %188 = shalt.err (!%p185_p7)
}
  0x11   :  { %s240_s19 = smov 64   ;;  %s241_s20 = smov 4  }
  0x12   :  { %21 = dma.hbm_to_vmem [thread:$0]  %s306_s0, 128, %s16_s10, [#allocation3], %s240_s19, %s240_s19, %s241_s20  }
  0x13   :  { %s242_s23 = smov [#allocation5]   ;;  %s189_s27 = scalar_lea.hbm %s307_s1, 256 }
  0x14   :  { %s27_s24 = sshll.u32 %s242_s23, 4  ;;  %p190_p8 = scmp.ne.s32.totalorder %s307_s1, %s189_s27  ;;  %s28_s24 = int_to_ptr.vmem [resolvable:$true] %s27_s24 }
  0x15   :  { %p193_p9 = scmp.lt.u32.totalorder %s189_s27, %s307_s1 }
  0x17   :  { %p195_p10 = pnand %p193_p9, %p190_p8 }
  0x19   :  { %198 = shalt.err (!%p195_p10)
}
  0x1a   :  { %s199_s4 = scalar_lea.vmem %s28_s24, 256  ;;  %p204_p12 = scmp.lt.s32.totalorder %s28_s24, %s28_s24 }
  0x1b   :  { %p200_p11 = scmp.ne.s32.totalorder %s28_s24, %s199_s4  ;;  %p205_p13 = scmp.lt.s32.totalorder %s199_s4, %s199_s4 }
  0x1d   :  { %p206_p0 = por %p205_p13, %p204_p12 }
  0x1f   :  { %p207_p1 = pnand %p206_p0, %p200_p11 }
  0x21   :  { %210 = shalt.err (!%p207_p1)
}
  0x22   :  { %33 = dma.hbm_to_vmem [thread:$0]  %s307_s1, 256, %s28_s24, [#allocation6], %s240_s19, %s240_s19, %s241_s20  }
  0x23   :  { %233 = dma.done.wait [#allocation3], 128  }
  0x24   :  { %234 = vsyncadd [#allocation3], 4294967168 }
  0x25   :  { %235 = dma.done.wait [#allocation6], 256  }
  0x26   :  { %236 = vsyncadd [#allocation6], 4294967040  ;;  %v243_v0 = vmov 0.0   ;;  %vm244_vm0 = vmmov 0   ;;  %v164_v1 = vld [vmem:[#allocation5] sm:$0xff]   ;;  %v165_v2 = vld [vmem:[#allocation5 + $0x8] sm:$0xff]  }
  0x27   :  { %149 = vmatprep.subr.bf16.mxu0 %v243_v0  ;;  %153 = vmatprep.mubr.msk.bf16.mxu0 %vm244_vm0, %v243_v0  ;;  %v166_v3 = vld [vmem:[#allocation2] sm:$0xff]   ;;  %vm64_vm1 = vcmask 261120   ;;  %vm117_vm2 = vcmask 257024   ;;  %s245_s6 = smov [#allocation7]  }
  0x28   :  { %150 = vmatpush3.bf16.msra.mxu0 %v164_v1  ;;  %s125_s1 = sshll.u32 %s245_s6, 4  ;;  %s126_s1 = int_to_ptr.vmem [resolvable:$true] %s125_s1 }
  0x29   :  { %151 = vmatprep.subr.bf16.mxu0 %v243_v0  ;;  %s211_s7 = scalar_lea.vmem %s126_s1, 128  ;;  %p216_p3 = scmp.lt.s32.totalorder %s126_s1, %s126_s1 }
  0x2a   :  { %p212_p2 = scmp.ne.s32.totalorder %s126_s1, %s211_s7  ;;  %p217_p4 = scmp.lt.s32.totalorder %s211_s7, %s211_s7 }
  0x2c   :  { %152 = vmatpush3.bf16.msra.mxu0 %v165_v2  ;;  %p218_p5 = por %p217_p4, %p216_p3 }
  0x2e   :  { %p219_p6 = pnand %p218_p5, %p212_p2 }
  0x2f   :  { %154 = vmatmul.mubr.msk.bf16.vlgmr.msra.gmra.mrb[0].mxu0 %vm64_vm1, %v166_v3 }
 0x102   :  { %v102_v4 = vpop.f32.mrb[0].mxu0 }
 0x103   :  { %v144_v5 = vpack.c.bf16 %v102_v4, %v102_v4  ;;  %v155_v6 = vpop.f32.mrb[1].mxu0 }
 0x104   :  { %v105_v7 = vpop.f32.mrb[2].mxu0 }
 0x105   :  { %v145_v8 = vpack.c.bf16 %v105_v7, %v105_v7  ;;  %v156_v9 = vpop.f32.mrb[3].mxu0  ;;  %118 = vst.msk [vmem:[#allocation7] sm:$0xf] %vm117_vm2, %v144_v5 }
 0x107   :  { %119 = vst.msk [vmem:[#allocation7 + $0x4] sm:$0xf] %vm117_vm2, %v145_v8 }
 0x108   :  { %222 = shalt.err (!%p219_p6)
}
 0x109   :  { %s223_s10 = scalar_lea.hbm %s308_s2, 128 }
 0x10a   :  { %p224_p7 = scmp.ne.s32.totalorder %s308_s2, %s223_s10  ;;  %p227_p8 = scmp.lt.u32.totalorder %s223_s10, %s308_s2 }
 0x10c   :  { %p229_p9 = pnand %p227_p8, %p224_p7 }
 0x10e   :  { %232 = shalt.err (!%p229_p9)
}
 0x10f   :  { %131 = dma.vmem_to_hbm [thread:$0]  %s126_s1, 128, %s308_s2, [#allocation4], %s240_s19, %s240_s19, %s241_s20  }
 0x110   :  { %237 = dma.done.wait [#allocation4], 128  }
 0x111   :  { %238 = vsyncadd [#allocation4], 4294967168 }
 0x112   :  { %135 = vsyncpa [#allocation3], 1 }
 0x113   :  { %136 = vsyncpa [#allocation6], 1 }
 0x114   :  { %137 = vsyncpa [#allocation4], 1 }

</bundles_post_ra>
